<compile_context>
chip_gen: v6e
topology: v6e:2x2x1
jax: 0.10.0
libtpu: 0.0.40
codegen_flags: <defaults>
</compile_context>

<pallas_src>
import jax
import jax.numpy as jnp
from jax import lax
from jax.experimental import pallas as pl
from jax.experimental.pallas import tpu as pltpu


# ---------------------------------------------------------------------------
# Pallas kernel
# ---------------------------------------------------------------------------
def critic_kernel(state_ref, action_ref, w1s_ref, w1a_ref, b1_ref,
                  w2_ref, b2_ref, w3_ref, b3_ref, q_ref):
    # Layer 1: fused concat via split-w1 matmuls, f32 MXU accumulation.
    h1 = jnp.dot(state_ref[...], w1s_ref[...],
                 preferred_element_type=jnp.float32)
    h1 = h1 + jnp.dot(action_ref[...], w1a_ref[...],
                      preferred_element_type=jnp.float32)
    h1 = jnp.maximum(h1 + b1_ref[...], 0.0)                      # (TB, H)

    # Layer 2.
    h2 = jnp.dot(h1, w2_ref[...], preferred_element_type=jnp.float32)
    h2 = jnp.maximum(h2 + b2_ref[...], 0.0)                      # (TB, H)

    # Layer 3: (H -> 1) projection as an M=1 MXU matmul contracting both
    # last dims -> lane-dense (1, TB) row, no masked column store.
    q = lax.dot_general(w3_ref[...], h2,
                        dimension_numbers=(((1,), (1,)), ((), ())),
                        preferred_element_type=jnp.float32)      # (1, TB)
    q_ref[...] = (q + b3_ref[0, 0]).astype(q_ref.dtype)


def _round_up(x, m):
    return (x + m - 1) // m * m


def critic_forward(state, action, params, *, block_b=2048):
    """Pallas implementation of Critic.forward(state, action)."""
    w1_s, w1_a = params["w1_s"], params["w1_a"]
    b1, w2, b2 = params["b1"], params["w2"], params["b2"]
    w3, b3 = params["w3"], params["b3"]          # w3 is a (1, H) row

    state = state.astype(jnp.float32)
    action = action.astype(jnp.float32)

    B, S = state.shape
    A = action.shape[1]
    H = w2.shape[0]
    assert block_b >= 8

    # Batch tile selection:
    #   * small batch  -> single grid step, TB = round_up(B, 8)
    #   * large batch  -> TB ~ round_up(B / n_steps, 128) so the lane-dense
    #     (1, TB) output block satisfies the 128-lane constraint and padding
    #     waste stays small; >= 2 steps keeps v7x megacore sharding alive.
    B8 = _round_up(B, 8)
    if B8 <= block_b:
        TB = B8
    else:
        n_target = -(-B8 // block_b)
        TB = _round_up(-(-B8 // n_target), 128)
    n_steps = -(-B8 // TB)
    Bp = n_steps * TB

    if Bp != B:
        pad = Bp - B
        state = jnp.pad(state, ((0, pad), (0, 0)))
        action = jnp.pad(action, ((0, pad), (0, 0)))

    act_spec = lambda f: pl.BlockSpec((TB, f), lambda i: (i, 0))
    # Weights / biases stay VMEM-resident across grid steps (constant map).
    const_spec = lambda r, c: pl.BlockSpec((r, c), lambda i: (0, 0))
    smem_spec = pl.BlockSpec(memory_space=pltpu.MemorySpace.SMEM)

    out = pl.pallas_call(
        critic_kernel,
        out_shape=jax.ShapeDtypeStruct((1, Bp), jnp.float32),
        grid=(n_steps,),
        in_specs=[
            act_spec(S),            # state tile   (TB, S)
            act_spec(A),            # action tile  (TB, A)
            const_spec(S, H),       # w1_s
            const_spec(A, H),       # w1_a
            const_spec(1, H),       # b1
            const_spec(H, H),       # w2
            const_spec(1, H),       # b2
            const_spec(1, H),       # w3 row
            smem_spec,              # b3 scalar in SMEM
        ],
        out_specs=pl.BlockSpec((1, TB), lambda i: (0, i)),   # lane-dense row
        compiler_params=pltpu.CompilerParams(
            dimension_semantics=("parallel",)),
    )(state, action, w1_s, w1_a, b1, w2, b2, w3, b3)

    # (1, Bp) row slab -> (B, 1) column (padded rows dropped).
    return out.reshape(Bp, 1)[:B]


# ---------------------------------------------------------------------------
# Deterministic parameter init (mirrors weight_init: orthogonal W, zero bias).
# ---------------------------------------------------------------------------
def _orthogonal(key, out_features, in_features):
    """Orthogonal init like torch.nn.init.orthogonal_ (gain=1)."""
    rows, cols = out_features, in_features
    flat = jax.random.normal(key, (max(rows, cols), min(rows, cols)),
                             dtype=jnp.float32)
    q, r = jnp.linalg.qr(flat)
    q = q * jnp.sign(jnp.diagonal(r))[None, :]
    if rows < cols:
        q = q.T
    return q[:rows, :cols]            # PyTorch layout: (out, in)


def init_critic_params(key, state_dim, action_dim, hidden_dim):
    k1, k2, k3 = jax.random.split(key, 3)
    in_dim = state_dim + action_dim
    w1 = _orthogonal(k1, hidden_dim, in_dim)               # (H, S+A)
    return {
        "w1_s": w1[:, :state_dim].T,                       # (S, H)
        "w1_a": w1[:, state_dim:].T,                       # (A, H)
        "b1": jnp.zeros((1, hidden_dim), jnp.float32),
        "w2": _orthogonal(k2, hidden_dim, hidden_dim).T,   # (H, H)
        "b2": jnp.zeros((1, hidden_dim), jnp.float32),
        "w3": _orthogonal(k3, 1, hidden_dim),               # (1, H) row
        "b3": jnp.zeros((1, 1), jnp.float32),
    }


# ---------------------------------------------------------------------------
# Pure-JAX reference (same math as the PyTorch module).
# ---------------------------------------------------------------------------
def critic_ref(state, action, p):
    h = jax.nn.relu(state @ p["w1_s"] + action @ p["w1_a"] + p["b1"])
    h = jax.nn.relu(h @ p["w2"] + p["b2"])
    return h @ p["w3"].T + p["b3"]


if __name__ == "__main__":
    state_dim, action_dim, hidden_dim = 12, 4, 32
    key = jax.random.PRNGKey(0)
    kp, ks, ka = jax.random.split(key, 3)
    params = init_critic_params(kp, state_dim, action_dim, hidden_dim)

    # Case 1: small batch, single grid step.
    batch = 8
    state = jax.random.normal(ks, (batch, state_dim), dtype=jnp.float32)
    action = jax.random.normal(ka, (batch, action_dim), dtype=jnp.float32)
    q = critic_forward(state, action, params)
    jax.block_until_ready(q)
    q_ref = critic_ref(state, action, params)
    assert q.shape == (batch, 1)
    assert jnp.allclose(q, q_ref, atol=1e-4, rtol=1e-4)

    # Case 2: ragged batch exercising the multi-step tiled grid + padding
    # path (3 grid steps of TB=128, lane-dense 128-wide output blocks).
    batch2 = 300
    ks2, ka2 = jax.random.split(jax.random.PRNGKey(1))
    state2 = jax.random.normal(ks2, (batch2, state_dim), dtype=jnp.float32)
    action2 = jax.random.normal(ka2, (batch2, action_dim), dtype=jnp.float32)
    q2 = critic_forward(state2, action2, params, block_b=128)
    jax.block_until_ready(q2)
    q2_ref = critic_ref(state2, action2, params)
    assert q2.shape == (batch2, 1)
    assert jnp.allclose(q2, q2_ref, atol=1e-4, rtol=1e-4)

    print("KERNEL_OK")
</pallas_src>

<mosaic_0001>
module attributes {stable_mosaic.version = 11 : i64} {
  func.func @critic_kernel(%arg0: i32, %arg1: memref<8x12xf32, #tpu.memory_space<vmem>>, %arg2: memref<8x4xf32, #tpu.memory_space<vmem>>, %arg3: memref<12x32xf32, #tpu.memory_space<vmem>>, %arg4: memref<4x32xf32, #tpu.memory_space<vmem>>, %arg5: memref<1x32xf32, #tpu.memory_space<vmem>>, %arg6: memref<32x32xf32, #tpu.memory_space<vmem>>, %arg7: memref<1x32xf32, #tpu.memory_space<vmem>>, %arg8: memref<1x32xf32, #tpu.memory_space<vmem>>, %arg9: memref<1x1xf32, #tpu.memory_space<smem>>, %arg10: memref<1x8xf32, #tpu.memory_space<vmem>>) attributes {dimension_semantics = [#tpu.dimension_semantics<parallel>], iteration_bounds = array<i64: 1>, scalar_prefetch = 0 : i64, scratch_operands = 0 : i64, tpu.core_type = #tpu.core_type<tc>, window_params = [{transform_indices = @transform_0, window_bounds = array<i64: 8, 12>}, {transform_indices = @transform_1, window_bounds = array<i64: 8, 4>}, {pipeline_mode = #tpu.pipeline_mode<synchronous>, transform_indices = @transform_2, window_bounds = array<i64: 12, 32>}, {pipeline_mode = #tpu.pipeline_mode<synchronous>, transform_indices = @transform_3, window_bounds = array<i64: 4, 32>}, {pipeline_mode = #tpu.pipeline_mode<synchronous>, transform_indices = @transform_4, window_bounds = array<i64: 1, 32>}, {pipeline_mode = #tpu.pipeline_mode<synchronous>, transform_indices = @transform_5, window_bounds = array<i64: 32, 32>}, {pipeline_mode = #tpu.pipeline_mode<synchronous>, transform_indices = @transform_6, window_bounds = array<i64: 1, 32>}, {pipeline_mode = #tpu.pipeline_mode<synchronous>, transform_indices = @transform_7, window_bounds = array<i64: 1, 32>}, {transform_indices = @transform_8, window_bounds = array<i64: 1, 1>}, {transform_indices = @transform_9, window_bounds = array<i64: 1, 8>}]} {
    %c0 = arith.constant 0 : index
    %c0_0 = arith.constant 0 : index
    %0 = vector.load %arg1[%c0, %c0_0] : memref<8x12xf32, #tpu.memory_space<vmem>>, vector<8x12xf32>
    %c0_1 = arith.constant 0 : index
    %c0_2 = arith.constant 0 : index
    %1 = vector.load %arg3[%c0_1, %c0_2] : memref<12x32xf32, #tpu.memory_space<vmem>>, vector<12x32xf32>
    %cst = arith.constant dense<0.000000e+00> : vector<8x32xf32>
    %2 = tpu.matmul %0, %1, %cst {dimension_numbers = #tpu.dot_dimension_numbers<[1], [0], [0], [1], [0, 0, 1, 1], [], []>} : vector<8x12xf32>, vector<12x32xf32>, vector<8x32xf32> -> vector<8x32xf32>
    %c0_3 = arith.constant 0 : index
    %c0_4 = arith.constant 0 : index
    %3 = vector.load %arg2[%c0_3, %c0_4] : memref<8x4xf32, #tpu.memory_space<vmem>>, vector<8x4xf32>
    %c0_5 = arith.constant 0 : index
    %c0_6 = arith.constant 0 : index
    %4 = vector.load %arg4[%c0_5, %c0_6] : memref<4x32xf32, #tpu.memory_space<vmem>>, vector<4x32xf32>
    %cst_7 = arith.constant dense<0.000000e+00> : vector<8x32xf32>
    %5 = tpu.matmul %3, %4, %cst_7 {dimension_numbers = #tpu.dot_dimension_numbers<[1], [0], [0], [1], [0, 0, 1, 1], [], []>} : vector<8x4xf32>, vector<4x32xf32>, vector<8x32xf32> -> vector<8x32xf32>
    %6 = arith.addf %2, %5 : vector<8x32xf32>
    %c0_8 = arith.constant 0 : index
    %c0_9 = arith.constant 0 : index
    %7 = vector.load %arg5[%c0_8, %c0_9] : memref<1x32xf32, #tpu.memory_space<vmem>>, vector<1x32xf32>
    %8 = vector.broadcast %7 : vector<1x32xf32> to vector<8x32xf32>
    %9 = arith.addf %6, %8 : vector<8x32xf32>
    %cst_10 = arith.constant 0.000000e+00 : f32
    %10 = vector.broadcast %cst_10 : f32 to vector<8x32xf32>
    %11 = arith.maximumf %9, %10 : vector<8x32xf32>
    %c0_11 = arith.constant 0 : index
    %c0_12 = arith.constant 0 : index
    %12 = vector.load %arg6[%c0_11, %c0_12] : memref<32x32xf32, #tpu.memory_space<vmem>>, vector<32x32xf32>
    %cst_13 = arith.constant dense<0.000000e+00> : vector<8x32xf32>
    %13 = tpu.matmul %11, %12, %cst_13 {dimension_numbers = #tpu.dot_dimension_numbers<[1], [0], [0], [1], [0, 0, 1, 1], [], []>} : vector<8x32xf32>, vector<32x32xf32>, vector<8x32xf32> -> vector<8x32xf32>
    %c0_14 = arith.constant 0 : index
    %c0_15 = arith.constant 0 : index
    %14 = vector.load %arg7[%c0_14, %c0_15] : memref<1x32xf32, #tpu.memory_space<vmem>>, vector<1x32xf32>
    %15 = vector.broadcast %14 : vector<1x32xf32> to vector<8x32xf32>
    %16 = arith.addf %13, %15 : vector<8x32xf32>
    %cst_16 = arith.constant 0.000000e+00 : f32
    %17 = vector.broadcast %cst_16 : f32 to vector<8x32xf32>
    %18 = arith.maximumf %16, %17 : vector<8x32xf32>
    %c0_17 = arith.constant 0 : index
    %c0_18 = arith.constant 0 : index
    %19 = vector.load %arg8[%c0_17, %c0_18] : memref<1x32xf32, #tpu.memory_space<vmem>>, vector<1x32xf32>
    %cst_19 = arith.constant dense<0.000000e+00> : vector<1x8xf32>
    %20 = tpu.matmul %19, %18, %cst_19 {dimension_numbers = #tpu.dot_dimension_numbers<[1], [1], [0], [0], [0, 0, 1, 0], [], []>} : vector<1x32xf32>, vector<8x32xf32>, vector<1x8xf32> -> vector<1x8xf32>
    %c0_20 = arith.constant 0 : index
    %c0_21 = arith.constant 0 : index
    %21 = memref.load %arg9[%c0_20, %c0_21] : memref<1x1xf32, #tpu.memory_space<smem>>
    %22 = vector.broadcast %21 : f32 to vector<1x8xf32>
    %23 = arith.addf %20, %22 : vector<1x8xf32>
    %c0_22 = arith.constant 0 : index
    %c0_23 = arith.constant 0 : index
    %24 = vector.load %arg10[%c0_22, %c0_23] : memref<1x8xf32, #tpu.memory_space<vmem>>, vector<1x8xf32>
    tpu.vector_store %arg10[%c0_22, %c0_23], %23 {strides = array<i32>} : memref<1x8xf32, #tpu.memory_space<vmem>>, vector<1x8xf32>,
    return
  }
  func.func @transform_0(%arg0: i32) -> (i32, i32) {
    %c0_i32 = arith.constant 0 : i32
    %c0_i32_0 = arith.constant 0 : i32
    return %arg0, %c0_i32 : i32, i32
  }
  func.func @transform_1(%arg0: i32) -> (i32, i32) {
    %c0_i32 = arith.constant 0 : i32
    %c0_i32_0 = arith.constant 0 : i32
    return %arg0, %c0_i32 : i32, i32
  }
  func.func @transform_2(%arg0: i32) -> (i32, i32) {
    %c0_i32 = arith.constant 0 : i32
    %c0_i32_0 = arith.constant 0 : i32
    %c0_i32_1 = arith.constant 0 : i32
    return %c0_i32, %c0_i32_0 : i32, i32
  }
  func.func @transform_3(%arg0: i32) -> (i32, i32) {
    %c0_i32 = arith.constant 0 : i32
    %c0_i32_0 = arith.constant 0 : i32
    %c0_i32_1 = arith.constant 0 : i32
    return %c0_i32, %c0_i32_0 : i32, i32
  }
  func.func @transform_4(%arg0: i32) -> (i32, i32) {
    %c0_i32 = arith.constant 0 : i32
    %c0_i32_0 = arith.constant 0 : i32
    %c0_i32_1 = arith.constant 0 : i32
    return %c0_i32, %c0_i32_0 : i32, i32
  }
  func.func @transform_5(%arg0: i32) -> (i32, i32) {
    %c0_i32 = arith.constant 0 : i32
    %c0_i32_0 = arith.constant 0 : i32
    %c0_i32_1 = arith.constant 0 : i32
    return %c0_i32, %c0_i32_0 : i32, i32
  }
  func.func @transform_6(%arg0: i32) -> (i32, i32) {
    %c0_i32 = arith.constant 0 : i32
    %c0_i32_0 = arith.constant 0 : i32
    %c0_i32_1 = arith.constant 0 : i32
    return %c0_i32, %c0_i32_0 : i32, i32
  }
  func.func @transform_7(%arg0: i32) -> (i32, i32) {
    %c0_i32 = arith.constant 0 : i32
    %c0_i32_0 = arith.constant 0 : i32
    %c0_i32_1 = arith.constant 0 : i32
    return %c0_i32, %c0_i32_0 : i32, i32
  }
  func.func @transform_8(%arg0: i32) -> (i32, i32) {
    %c0_i32 = arith.constant 0 : i32
    %c0_i32_0 = arith.constant 0 : i32
    %c0_i32_1 = arith.constant 0 : i32
    return %c0_i32, %c0_i32_0 : i32, i32
  }
  func.func @transform_9(%arg0: i32) -> (i32, i32) {
    %c0_i32 = arith.constant 0 : i32
    %c0_i32_0 = arith.constant 0 : i32
    return %c0_i32, %arg0 : i32, i32
  }
}

</mosaic_0001>

<bundles_post_ra>
// kernel: tpu_custom_call.1
= control target key start
LH: loop header
LB: loop body
LE: loop exit
PB: predicated region body
PF: predicated region fallthrough
CT: control target
= control target key end

     0   :  { %15 = vsyncpa [#allocation4], 0  ;;  %s661_s0 = inlined_call_operand.hbm [shape: f32[8,12], index: 0, kind: input, shape index: {}]   ;;  %s662_s1 = inlined_call_operand.vmem [shape: f32[8,4], index: 1, kind: input, shape index: {}]   ;;  %s663_s2 = inlined_call_operand.vmem [shape: f32[12,32], index: 2, kind: input, shape index: {}]   ;;  %s664_s3 = inlined_call_operand.hbm [shape: f32[4,32], index: 3, kind: input, shape index: {}]   ;;  %s665_s4 = inlined_call_operand.vmem [shape: f32[1,32], index: 4, kind: input, shape index: {}]   ;;  %s666_s5 = inlined_call_operand.hbm [shape: f32[32,32], index: 5, kind: input, shape index: {}]   ;;  %s667_s6 = inlined_call_operand.vmem [shape: f32[1,32], index: 6, kind: input, shape index: {}]   ;;  %s668_s7 = inlined_call_operand.vmem [shape: f32[1,32], index: 7, kind: input, shape index: {}]   ;;  %s669_s8 = inlined_call_operand.<no memory space> [shape: f32[1,1], index: 8, kind: input, shape index: {}]   ;;  %s670_s9 = inlined_call_operand.hbm [shape: f32[1,8], index: 9, kind: output, shape index: {}]  }
   0x1   :  { %16 = vsyncpa [#allocation7], 0 }
   0x2   :  { %17 = vsyncpa [#allocation5], 0  ;;  %s566_s30 = smov [#allocation6]   ;;  %s567_s11 = smov [#allocation3]  }
   0x3   :  { %s38_s10 = sshll.u32 %s566_s30, 4  ;;  %s24_s12 = sshll.u32 %s567_s11, 4  ;;  %s39_s10 = int_to_ptr.vmem [resolvable:$true] %s38_s10  ;;  %s25_s12 = int_to_ptr.vmem [resolvable:$true] %s24_s12 }
   0x4   :  { %s488_s13 = scalar_lea.vmem %s39_s10, 64  ;;  %p493_p1 = scmp.lt.s32.totalorder %s39_s10, %s39_s10 }
   0x5   :  { %p489_p0 = scmp.ne.s32.totalorder %s39_s10, %s488_s13  ;;  %p494_p2 = scmp.lt.s32.totalorder %s488_s13, %s488_s13 }
   0x7   :  { %p495_p3 = por %p494_p2, %p493_p1 }
   0x9   :  { %p496_p4 = pnand %p495_p3, %p489_p0 }
   0xb   :  { %499 = shalt.err (!%p496_p4)
}
   0xc   :  { %41 = dma.hbm_to_vmem [thread:$0]  %s664_s3, 64, %s39_s10, [#allocation7]  }
   0xd   :  { %s508_s16 = scalar_lea.vmem %s25_s12, 128  ;;  %p513_p6 = scmp.lt.s32.totalorder %s25_s12, %s25_s12 }
   0xe   :  { %p509_p5 = scmp.ne.s32.totalorder %s25_s12, %s508_s16  ;;  %p514_p7 = scmp.lt.s32.totalorder %s508_s16, %s508_s16 }
  0x10   :  { %p515_p8 = por %p514_p7, %p513_p6 }
  0x12   :  { %p516_p9 = pnand %p515_p8, %p509_p5 }
  0x14   :  { %519 = shalt.err (!%p516_p9)
}
  0x15   :  { %27 = dma.hbm_to_vmem [thread:$0]  %s661_s0, 128, %s25_s12, [#allocation4]  }
  0x16   :  { %s568_s19 = smov [#allocation8]  }
  0x17   :  { %s49_s20 = sshll.u32 %s568_s19, 4  ;;  %s50_s20 = int_to_ptr.vmem [resolvable:$true] %s49_s20 }
  0x18   :  { %s528_s21 = scalar_lea.vmem %s50_s20, 512  ;;  %p533_p11 = scmp.lt.s32.totalorder %s50_s20, %s50_s20 }
  0x19   :  { %p529_p10 = scmp.ne.s32.totalorder %s50_s20, %s528_s21  ;;  %p534_p12 = scmp.lt.s32.totalorder %s528_s21, %s528_s21 }
  0x1b   :  { %p535_p13 = por %p534_p12, %p533_p11 }
  0x1d   :  { %p536_p0 = pnand %p535_p13, %p529_p10 }
  0x1f   :  { %539 = shalt.err (!%p536_p0)
}
  0x20   :  { %s569_s3 = smov 128   ;;  %s570_s22 = smov 8  }
  0x21   :  { %55 = dma.hbm_to_vmem [thread:$0]  %s666_s5, 512, %s50_s20, [#allocation7], %s569_s3, %s569_s3, %s570_s22  }
  0x22   :  { %560 = dma.done.wait [#allocation4], 128  }
  0x23   :  { %561 = vsyncadd [#allocation4], 4294967168 }
  0x24   :  { %562 = dma.done.wait [#allocation7], 576  }
  0x25   :  { %563 = vsyncadd [#allocation7], 4294966720  ;;  %v571_v0 = vmov 0.0   ;;  %vm572_vm0 = vmmov 0   ;;  %vm80_vm1 = vcmask 1043456   ;;  %vm76_vm2 = vcmask 31744  }
  0x26   :  { %444 = vmatprep.subr.mxu0 %v571_v0  ;;  %449 = vmatprep.subr.mxu1 %v571_v0  ;;  %v75_v1 = vld [vmem:[#allocation6] sm:$0xf]  ;;  %v74_v3 = vld [vmem:[%s662_s1] sm:$0xff]  ;;  %vm154_vm3 = vcmask 97280   ;;  %v241_v8 = vld [vmem:[#allocation8 + $0x8] sm:$0xff]  ;;  %vm251_vm4 = vcmask 261120   ;;  %v328_v24 = vstv %s669_s8 }
  0x27   :  { %446 = vmatprep.mubr.msk.f32.mxu0 %vm572_vm0, %v571_v0  ;;  %453 = vmatprep.mubr.msk.f32.mxu1 %vm572_vm0, %v571_v0  ;;  %v73_v2 = vld [vmem:[%s663_s2 + $0x8] sm:$0xf]  ;;  %v72_v4 = vld [vmem:[%s663_s2] sm:$0xff]  ;;  %v240_v9 = vld [vmem:[#allocation8] sm:$0xff]  ;;  %s573_s13 = smov [#allocation9]   ;;  %vm405_vm5 = vcmask 57344  }
  0x28   :  { %445 = vmatpush3.msk.msra.mxu0 %vm80_vm1, %v75_v1  ;;  %450 = vmatpush3.msk.msra.mxu1 %vm80_vm1, %v73_v2  ;;  %v71_v5 = vld [vmem:[#allocation3] sm:$0xff]  ;;  %s413_s14 = sshll.u32 %s573_s13, 4  ;;  %s414_s14 = int_to_ptr.vmem [resolvable:$true] %s413_s14 }
  0x29   :  { %447 = vmatmul.mubr.msk.f32.vlgmr.msra.gmra.mxu0 %vm76_vm2, %v74_v3  ;;  %451 = vmatprep.subr.mxu1 %v571_v0  ;;  %v243_v6 = vld [vmem:[#allocation8 + $0x18] sm:$0xff]  ;;  %v242_v7 = vld [vmem:[#allocation8 + $0x10] sm:$0xff]  ;;  %s544_s15 = scalar_lea.vmem %s414_s14, 32  ;;  %p545_p2 = scmp.lt.s32.totalorder %s414_s14, %s414_s14 }
  0x2a   :  { %452 = vmatpush3.msra.mxu1 %v72_v4  ;;  %456 = vmatprep.subr.mxu0 %v571_v0  ;;  %v427_v13 = vld [vmem:[%s665_s4] ss:$0 sm:$0xff] }
  0x2b   :  { %454 = vmatmul.mubr.msk.f32.vlgmr.msra.gmra.mxu1 %vm154_vm3, %v71_v5  ;;  %464 = vmatprep.mubr.msk.f32.mxu0 %vm572_vm0, %v571_v0  ;;  %v428_v18 = vld [vmem:[%s667_s6] ss:$0 sm:$0xff]  ;;  %s540_s6 = scalar_lea.vmem %s414_s14, 16 }
  0x2c   :  { %467 = vmatprep.subr.mxu1 %v571_v0  ;;  %469 = vmatprep.mubr.msk.f32.mxu1 %vm572_vm0, %v571_v0  ;;  %v326_v23 = vld [vmem:[%s668_s7] sm:$0x1]  ;;  %p541_p1 = scmp.ne.s32.totalorder %s414_s14, %s540_s6  ;;  %p546_p3 = scmp.lt.s32.totalorder %s544_s15, %s540_s6 }
  0x2d   :  { %457 = vmatpush3.msra.mxu0 %v243_v6 }
  0x2e   :  { %458 = vmatprep.subr.mxu0 %v571_v0  ;;  %p547_p4 = por %p546_p3, %p545_p2 }
  0x2f   :  { %459 = vmatpush3.msra.mxu0 %v242_v7 }
  0x30   :  { %460 = vmatprep.subr.mxu0 %v571_v0  ;;  %p548_p5 = pnand %p547_p4, %p541_p1 }
  0x31   :  { %461 = vmatpush3.msra.mxu0 %v241_v8 }
  0x32   :  { %462 = vmatprep.subr.mxu0 %v571_v0 }
  0x33   :  { %463 = vmatpush3.msra.mxu0 %v240_v9 }
  0xe9   :  { %v150_v10 = vpop.f32.mrf.mxu0 }
  0xeb   :  { %v448_v11 = vpop.f32.mrf.mxu0  ;;  %v227_v12 = vpop.f32.mrf.mxu1 }
  0xec   :  { %v228_v14 = vadd.f32 %v227_v12, %v150_v10 }
  0xed   :  { %v455_v15 = vpop.f32.mrf.mxu1 }
  0xee   :  { %v238_v16 = vadd.f32 %v427_v13, %v228_v14 }
  0xf0   :  { %v239_v17 = vmax.f32 %v238_v16, 0.0 }
  0xf2   :  { %465 = vmatmul.mubr.msk.f32.vlgmr.msra.gmra.mxu0 %vm251_vm4, %v239_v17 }
 0x1b2   :  { %v321_v19 = vpop.f32.mrf.mxu0 }
 0x1b3   :  { %v322_v20 = vadd.f32 %v428_v18, %v321_v19 }
 0x1b4   :  { %v466_v21 = vpop.f32.mrf.mxu0 }
 0x1b5   :  { %v325_v22 = vmax.f32 %v322_v20, 0.0 }
 0x1b7   :  { %468 = vmatpush3.xpose.msk.msra.mxu1 %vm251_vm4, %v325_v22 }
 0x1ba   :  { %470 = vmatmul.mubr.msk.f32.vlgmr.msra.gmra.mxu1 %vm251_vm4, %v326_v23 }
 0x27a   :  { %v401_v25 = vpop.f32.mrf.mxu1 }
 0x27b   :  { %v402_v26 = vadd.f32 %v401_v25, %v328_v24 }
 0x27c   :  { %v471_v27 = vpop.f32.mrf.mxu1 }
 0x27d   :  { %406 = vst.msk [vmem:[#allocation9] sm:$0x1] %vm405_vm5, %v402_v26 }
 0x27e   :  { %551 = shalt.err (!%p548_p5)
}
 0x27f   :  { %416 = dma.vmem_to_hbm [thread:$0]  %s414_s14, 16, %s670_s9, [#allocation5]  }
 0x280   :  { %564 = dma.done.wait [#allocation5], 16  }
 0x281   :  { %565 = vsyncadd [#allocation5], 4294967280 }
 0x282   :  { %420 = vsyncpa [#allocation4], 1 }
 0x283   :  { %421 = vsyncpa [#allocation7], 1 }
 0x284   :  { %422 = vsyncpa [#allocation5], 1 }

</bundles_post_ra>
